<compile_context>
chip_gen: v7x
topology: tpu7x:2x2x1
jax: 0.10.0
libtpu: 0.0.40
codegen_flags: <defaults>
</compile_context>

<pallas_src>
import jax
import jax.numpy as jnp
from jax.experimental import pallas as pl
from jax.experimental.pallas import tpu as pltpu

LANES = 128
SUBLANES = 8
_VMEM_LIMIT_BYTES = 36 * 1024 * 1024     # within physical VMEM on v5e/v6e/v7x
_SMALL_INPUT_ELEMS = 1 << 15             # below this, skip the kernel launch


def _cdiv(a: int, b: int) -> int:
    return (a + b - 1) // b


def _device_kind() -> str:
    try:
        return jax.devices()[0].device_kind.lower()
    except Exception:
        return ""


def _num_tensorcores(kind: str) -> int:
    # v7x: 2 TensorCores per chip; v5e / v6e: 1 (the axis would only cost padding).
    return 2 if ("v7" in kind or "7x" in kind) else 1


def _default_tile_rows(kind: str) -> int:
    # 8192 rows -> 4 MiB/block, 16 MiB of double-buffered inputs (under the 36 MiB
    # limit we request).  Keep 4096 on v5e (8 MiB of buffers, ~90% of its roofline).
    return 4096 if "v5" in kind else 8192


def _wmse_partial_kernel(pred_ref, targ_ref, out_ref):
    """Accumulate per-lane sums of squared errors.

    grid = (num_cores, tiles_per_core); axis 0 "parallel", axis 1 "arbitrary".
    out_ref is an (8, 128) f32 block resident across axis 1 -> accumulator.
    """
    t = pl.program_id(1)

    @pl.when(t == 0)
    def _init():
        out_ref[...] = jnp.zeros_like(out_ref)

    diff = pred_ref[...].astype(jnp.float32) - targ_ref[...].astype(jnp.float32)
    sq = diff * diff                                               # (tile_rows, 128)
    # Layout-preserving sublane-group reduction: (T,128)->(T/8,8,128); VPU adds only.
    out_ref[...] += jnp.sum(sq.reshape(-1, SUBLANES, LANES), axis=0)   # (8, 128)


def _jnp_column_sums(predicted, target):
    d = predicted.astype(jnp.float32) - target.astype(jnp.float32)
    return jnp.sum(d * d, axis=0)


def weighted_mse_loss(predicted, target, weights=None, reduction="mean",
                      max_tile_rows=None, force_pallas=False):
    """Pallas equivalent of WeightedMseLoss.forward.

    predicted, target: [B, C].  Returns scalar for reduction='mean', [C] for 'sum'
    (float32 accumulation regardless of input dtype).
    """
    assert reduction in ("sum", "mean"), (
        f"Reduction method: {reduction} not implemented. "
        "Available reduction methods: [sum,mean]")
    B, C = predicted.shape
    assert target.shape == (B, C)
    if weights is None:
        weights = [1.0] * C                       # module default buffer (ones)
    w = jnp.asarray(weights, dtype=jnp.float32)
    assert w.shape == (C,)

    def finish(col_sums):
        if reduction == "mean":
            # mean_c( w_c * mean_b(sq) )
            return jnp.mean(w * (col_sums / B))
        return w * col_sums                       # [C]

    total = B * C
    kind = _device_kind()
    num_cores = _num_tensorcores(kind)
    if max_tile_rows is None:
        max_tile_rows = _default_tile_rows(kind)
    max_tile_rows = max(SUBLANES, (int(max_tile_rows) // SUBLANES) * SUBLANES)

    # Small-input fast path + fallback when the lane fold (column == lane % C)
    # would not apply (requires C | 128).
    if ((total < _SMALL_INPUT_ELEMS) and not force_pallas) or (LANES % C != 0):
        return finish(_jnp_column_sums(predicted, target))

    # ---- lane-dense view of the inputs ----
    flat_p = predicted.reshape(-1)                # row-major flatten (free)
    flat_t = target.reshape(-1)
    rows = _cdiv(total, LANES)
    if total % LANES != 0:
        # Pads < 128 elements, but jnp.pad materializes one extra copy of the inputs.
        # It only triggers when B*C is not a multiple of 128; the aligned case below
        # is a pure zero-copy bitcast reshape.
        pad = rows * LANES - total
        flat_p = jnp.pad(flat_p, (0, pad))
        flat_t = jnp.pad(flat_t, (0, pad))
    p2d = flat_p.reshape(rows, LANES)
    t2d = flat_t.reshape(rows, LANES)

    # ---- balanced tile geometry (all static Python ints) ----
    rows_per_core = rows // num_cores
    tiles_per_core = max(1, _cdiv(rows_per_core, max_tile_rows))
    tile_rows = (rows_per_core // tiles_per_core // SUBLANES) * SUBLANES
    if tile_rows == 0:                            # too small for the kernel geometry
        return finish(_jnp_column_sums(predicted, target))
    body_rows = num_cores * tiles_per_core * tile_rows      # exactly covered, <= rows

    data_spec = pl.BlockSpec((tile_rows, LANES),
                             lambda c, t: (c * tiles_per_core + t, 0))

    partials = pl.pallas_call(
        _wmse_partial_kernel,
        out_shape=jax.ShapeDtypeStruct((num_cores, SUBLANES, LANES), jnp.float32),
        grid=(num_cores, tiles_per_core),
        in_specs=[data_spec, data_spec],
        out_specs=pl.BlockSpec((None, SUBLANES, LANES), lambda c, t: (c, 0, 0)),
        compiler_params=pltpu.CompilerParams(
            dimension_semantics=("parallel", "arbitrary"),
            vmem_limit_bytes=_VMEM_LIMIT_BYTES),
    )(p2d, t2d)

    # ---- tiny epilogue on (num_cores, 8, 128) partial sums ----
    lane_tot = jnp.sum(partials, axis=(0, 1))                       # (128,)
    # Fold interleaved lanes back into columns (column identity == lane % C).
    col_sums = jnp.sum(lane_tot.reshape(LANES // C, C), axis=0)     # (C,)
    if body_rows < rows:
        # Leftover rows not covered by the tile grid (plus any pad zeros): one tiny
        # fused XLA reduce that only touches the tail bytes.
        col_sums = col_sums + _jnp_column_sums(
            p2d[body_rows:].reshape(-1, C), t2d[body_rows:].reshape(-1, C))
    return finish(col_sums)


if __name__ == "__main__":
    key = jax.random.PRNGKey(0)
    ks = jax.random.split(key, 8)

    def ref_loss(p, t, wts, reduction):
        wts = jnp.asarray(wts, jnp.float32)
        sq = (p.astype(jnp.float32) - t.astype(jnp.float32)) ** 2
        if reduction == "mean":
            return jnp.mean(wts * jnp.mean(sq, axis=0))
        return wts * jnp.sum(sq, axis=0)

    C = 2  # two joysticks, as in the module spec

    # 1) Small input [batch=8, 2] (module-typical) -> fast path, both reductions.
    p_s = jax.random.normal(ks[0], (8, C), jnp.float32)
    t_s = jax.random.normal(ks[1], (8, C), jnp.float32)
    out_mean = jax.block_until_ready(weighted_mse_loss(p_s, t_s, None, "mean"))
    out_sum = jax.block_until_ready(weighted_mse_loss(p_s, t_s, [0.5, 2.0], "sum"))
    assert out_sum.shape == (C,)
    assert jnp.allclose(out_mean, ref_loss(p_s, t_s, [1.0, 1.0], "mean"),
                        rtol=1e-5, atol=1e-6)
    assert jnp.allclose(out_sum, ref_loss(p_s, t_s, [0.5, 2.0], "sum"),
                        rtol=1e-5, atol=1e-5)

    # 2) Pallas path: lane-aligned total (zero-copy reshape) + leftover-row tail,
    #    multi-tile accumulation forced via a small tile.
    p_a = jax.random.normal(ks[2], (64_000, C), jnp.float32)
    t_a = jax.random.normal(ks[3], (64_000, C), jnp.float32)
    got_m = jax.block_until_ready(weighted_mse_loss(
        p_a, t_a, [0.5, 2.0], "mean", max_tile_rows=64, force_pallas=True))
    got_s = jax.block_until_ready(weighted_mse_loss(
        p_a, t_a, [0.5, 2.0], "sum", max_tile_rows=64, force_pallas=True))
    assert jnp.allclose(got_m, ref_loss(p_a, t_a, [0.5, 2.0], "mean"),
                        rtol=1e-4, atol=1e-4)
    assert jnp.allclose(got_s, ref_loss(p_a, t_a, [0.5, 2.0], "sum"),
                        rtol=1e-4, atol=1e-2)

    # 3) Pallas path: misaligned total (minimal-pad branch), bf16 inputs, default tiles.
    p_b = jax.random.normal(ks[4], (50_001, C), jnp.bfloat16)
    t_b = jax.random.normal(ks[5], (50_001, C), jnp.bfloat16)
    got_b = jax.block_until_ready(weighted_mse_loss(
        p_b, t_b, [1.0, 1.0], "mean", force_pallas=True))
    assert jnp.allclose(got_b, ref_loss(p_b, t_b, [1.0, 1.0], "mean"),
                        rtol=1e-4, atol=1e-4)

    # 4) Pallas path: larger f32 input with default (big) tiles.
    p_c = jax.random.normal(ks[6], (400_000, C), jnp.float32)
    t_c = jax.random.normal(ks[7], (400_000, C), jnp.float32)
    got_c = jax.block_until_ready(weighted_mse_loss(
        p_c, t_c, [0.5, 2.0], "sum", force_pallas=True))
    assert jnp.allclose(got_c, ref_loss(p_c, t_c, [0.5, 2.0], "sum"),
                        rtol=1e-4, atol=1e-1)

    print("KERNEL_OK")
</pallas_src>

<mosaic_0001>
module attributes {stable_mosaic.version = 11 : i64} {
  func.func @_wmse_partial_kernel(%arg0: i32, %arg1: i32, %arg2: memref<56x128xf32, #tpu.memory_space<vmem>>, %arg3: memref<56x128xf32, #tpu.memory_space<vmem>>, %arg4: memref<1x8x128xf32, #tpu.memory_space<vmem>>) attributes {dimension_semantics = [#tpu.dimension_semantics<parallel>, #tpu.dimension_semantics<arbitrary>], iteration_bounds = array<i64: 1, 16>, scalar_prefetch = 0 : i64, scratch_operands = 0 : i64, tpu.core_type = #tpu.core_type<tc>, window_params = [{transform_indices = @transform_0, window_bounds = array<i64: 56, 128>}, {transform_indices = @transform_1, window_bounds = array<i64: 56, 128>}, {transform_indices = @transform_2, window_bounds = array<i64: 1, 8, 128>}]} {
    %c0_i32 = arith.constant 0 : i32
    %0 = arith.cmpi eq, %arg1, %c0_i32 : i32
    %1 = arith.extui %0 : i1 to i32
    %c0_i32_0 = arith.constant 0 : i32
    %2 = arith.cmpi ne, %1, %c0_i32_0 : i32
    scf.if %2 {
      %cst_10 = arith.constant 0.000000e+00 : f32
      %15 = vector.broadcast %cst_10 : f32 to vector<8x128xf32>
      %c0_11 = arith.constant 0 : index
      %c0_12 = arith.constant 0 : index
      %c0_13 = arith.constant 0 : index
      %16 = vector.load %arg4[%c0_11, %c0_12, %c0_13] : memref<1x8x128xf32, #tpu.memory_space<vmem>>, vector<1x8x128xf32>
      %17 = vector.shape_cast %16 : vector<1x8x128xf32> to vector<8x128xf32>
      %18 = vector.shape_cast %15 : vector<8x128xf32> to vector<1x8x128xf32>
      tpu.vector_store %arg4[%c0_11, %c0_12, %c0_13], %18 {strides = array<i32>} : memref<1x8x128xf32, #tpu.memory_space<vmem>>, vector<1x8x128xf32>,
    } else {
    }
    %c0 = arith.constant 0 : index
    %c0_1 = arith.constant 0 : index
    %3 = vector.load %arg2[%c0, %c0_1] : memref<56x128xf32, #tpu.memory_space<vmem>>, vector<56x128xf32>
    %c0_2 = arith.constant 0 : index
    %c0_3 = arith.constant 0 : index
    %4 = vector.load %arg3[%c0_2, %c0_3] : memref<56x128xf32, #tpu.memory_space<vmem>>, vector<56x128xf32>
    %5 = arith.subf %3, %4 : vector<56x128xf32>
    %6 = arith.mulf %5, %5 : vector<56x128xf32>
    %c0_4 = arith.constant 0 : index
    %c0_5 = arith.constant 0 : index
    %c0_6 = arith.constant 0 : index
    %7 = vector.load %arg4[%c0_4, %c0_5, %c0_6] : memref<1x8x128xf32, #tpu.memory_space<vmem>>, vector<1x8x128xf32>
    %8 = vector.shape_cast %7 : vector<1x8x128xf32> to vector<8x128xf32>
    %9 = vector.shape_cast %6 : vector<56x128xf32> to vector<7x8x128xf32>
    %cst = arith.constant dense<0.000000e+00> : vector<8x128xf32>
    %10 = vector.multi_reduction <add>, %9, %cst [0] : vector<7x8x128xf32> to vector<8x128xf32>
    %11 = arith.addf %8, %10 : vector<8x128xf32>
    %c0_7 = arith.constant 0 : index
    %c0_8 = arith.constant 0 : index
    %c0_9 = arith.constant 0 : index
    %12 = vector.load %arg4[%c0_7, %c0_8, %c0_9] : memref<1x8x128xf32, #tpu.memory_space<vmem>>, vector<1x8x128xf32>
    %13 = vector.shape_cast %12 : vector<1x8x128xf32> to vector<8x128xf32>
    %14 = vector.shape_cast %11 : vector<8x128xf32> to vector<1x8x128xf32>
    tpu.vector_store %arg4[%c0_7, %c0_8, %c0_9], %14 {strides = array<i32>} : memref<1x8x128xf32, #tpu.memory_space<vmem>>, vector<1x8x128xf32>,
    return
  }
  func.func @transform_0(%arg0: i32, %arg1: i32) -> (i32, i32) {
    %c16_i32 = arith.constant 16 : i32
    %0 = arith.muli %arg0, %c16_i32 : i32
    %1 = arith.addi %0, %arg1 : i32
    %c0_i32 = arith.constant 0 : i32
    %c0_i32_0 = arith.constant 0 : i32
    return %1, %c0_i32 : i32, i32
  }
  func.func @transform_1(%arg0: i32, %arg1: i32) -> (i32, i32) {
    %c16_i32 = arith.constant 16 : i32
    %0 = arith.muli %arg0, %c16_i32 : i32
    %1 = arith.addi %0, %arg1 : i32
    %c0_i32 = arith.constant 0 : i32
    %c0_i32_0 = arith.constant 0 : i32
    return %1, %c0_i32 : i32, i32
  }
  func.func @transform_2(%arg0: i32, %arg1: i32) -> (i32, i32, i32) {
    %c0_i32 = arith.constant 0 : i32
    %c0_i32_0 = arith.constant 0 : i32
    %c0_i32_1 = arith.constant 0 : i32
    return %arg0, %c0_i32, %c0_i32_0 : i32, i32, i32
  }
}

</mosaic_0001>

<bundles_post_ra>
// kernel: tpu_custom_call.1
= control target key start
LH: loop header
LB: loop body
LE: loop exit
PB: predicated region body
PF: predicated region fallthrough
CT: control target
= control target key end

     0   :  { %7 = vsyncpa [#allocation3], 0  ;;  %s805_s0 = inlined_call_operand.hbm [shape: f32[1000,128], index: 0, kind: input, shape index: {}]   ;;  %s806_s1 = inlined_call_operand.hbm [shape: f32[1000,128], index: 1, kind: input, shape index: {}]   ;;  %s807_s2 = inlined_call_operand.hbm [shape: f32[1,8,128], index: 2, kind: output, shape index: {}]  }
   0x1   :  { %9 = vsyncpa [#allocation3 + $0x1], 0 }
   0x2   :  { %10 = vsyncpa [#allocation6], 0 }
   0x3   :  { %12 = vsyncpa [#allocation6 + $0x1], 0 }
   0x4   :  { %13 = vsyncpa [#allocation4], 0  ;;  %s639_s9 = smov 0   ;;  %s641_s10 = smov 0  }
   0x5   :  { %s643_s11 = smov 0   ;;  %s645_s12 = smov 0  }
   0x6   :  { %s647_s13 = smov 0   ;;  %s649_s14 = smov 0  }
   0x7 LB: > { %s384_s15 = sadd.s32 4294967295, %s614_s14   ;;  %s28_s16 = sadd.s32 1, %s610_s13  ;;  %s614_s14 = sphi %s649_s14, %s19_s14   ;;  %s610_s13 = sphi %s647_s13, %s815_s13   ;;  %s606_s12 = sphi %s645_s12, %s814_s12   ;;  %s602_s11 = sphi %s643_s11, %s813_s11   ;;  %s598_s10 = sphi %s641_s10, %s812_s10   ;;  %s594_s9 = sphi %s639_s9, %s811_s9  }
   0x8   : > { %p29_p0 = scmp.ge.s32.totalorder %s28_s16, 16  ;;  %s42_s17 = sadd.s32 1, %s602_s11 }
   0x9   : > { %p49_p1 = scmp.ne.s32.totalorder %s602_s11, %s598_s10  ;;  %p50_p2 = scmp.eq.s32.totalorder %s614_s14, 0 }
   0xa   : > { %s817_s16 = smov (%p29_p0, %s28_s16), 0  ;;  %p55_p4 = scmp.ne.s32.totalorder %s598_s10, %s594_s9 }
   0xb   : > { %p675_p3 = por %p50_p2, %p49_p1  ;;  %s39_s19 = ssub.s32 %s610_s13, %s817_s16 }
   0xc   : > { %p56_p5 = scmp.eq.s32.totalorder %s384_s15, 0  ;;  %p40_p6 = scmp.eq.s32.totalorder %s39_s19, 0 }
   0xd   : > { %p386_p8 = scmp.ge.s32.totalorder %s614_s14, 16 }
   0xe   : > { %p684_p7 = por %p56_p5, %p55_p4 }
   0xf   : > { %s689_s21 = scalar_select %p40_p6, %s602_s11, %s42_s17  }
  0x10   : > { %131 = sbr.rel (%p386_p8) target bundleno = 77 (0x4d), region = 16 }
  0x17   : > { %134 = sbr.rel (!%p675_p3) target bundleno = 50 (0x32), region = 20  ;;  %s135_s22 = sand.u32 (%p675_p3), 1, %s602_s11  }
  0x18   : > { %s405_s23 = smul.u32 (%p675_p3), 56, %s135_s22  ;;  %s695_s24 = scalar_lea.sflag (%p675_p3), [#allocation3], %s135_s22 }
  0x19   : > { %s403_s26 = smul.u32 (%p675_p3), 896, %s610_s13  ;;  %s474_s6 = scalar_lea.hbm (%p675_p3), %s805_s0, 16000 }
  0x1a   : > { %s139_s25 = scalar_lea.vmem (%p675_p3), [#allocation2], %s405_s23 }
  0x1b   : > { %s154_s27 = sshll.u32 (%p675_p3), %s139_s25, 4  ;;  %s701_s30 = scalar_lea.hbm (%p675_p3), %s805_s0, %s403_s26  ;;  %s155_s27 = int_to_ptr.vmem [resolvable:$true] %s154_s27 }
  0x1c   : > { %s470_s3 = scalar_lea.hbm (%p675_p3), %s701_s30, 896  ;;  %p475_p10 = scmp.lt.u32.totalorder (%p675_p3), %s701_s30, %s805_s0 }
  0x1d   : > { %p471_p9 = scmp.ne.s32.totalorder (%p675_p3), %s701_s30, %s470_s3  ;;  %p476_p11 = scmp.lt.u32.totalorder (%p675_p3), %s474_s6, %s470_s3 }
  0x1e   : > { %p478_p13 = scmp.lt.u32.totalorder %s470_s3, %s701_s30 }
  0x1f   : > { %p477_p12 = por %p476_p11, %p475_p10 }
  0x21   : > { %p479_p0 = por %p478_p13, %p477_p12 }
  0x23   : > { %p480_p1 = pnand %p479_p0, %p471_p9 }
  0x25   : > { %483 = shalt.err (!%p480_p1)
}
  0x26   : > { %s484_s9 = scalar_lea.vmem %s155_s27, 896  ;;  %s616_s17 = smov [#allocation2]  }
  0x27   : > { %p485_p2 = scmp.ne.s32.totalorder %s155_s27, %s484_s9  ;;  %s488_s19 = sshll.u32 %s616_s17, 4  ;;  %s489_s19 = int_to_ptr.vmem [resolvable:$false] %s488_s19 }
  0x28   : > { %s490_s22 = scalar_lea.vmem %s489_s19, 1792  ;;  %p491_p4 = scmp.lt.s32.totalorder %s155_s27, %s489_s19 }
  0x29   : > { %p492_p5 = scmp.lt.s32.totalorder %s490_s22, %s484_s9 }
  0x2b   : > { %p493_p6 = por %p492_p5, %p491_p4 }
  0x2d   : > { %p494_p8 = pnand %p493_p6, %p485_p2 }
  0x2f   : > { %497 = shalt.err (!%p494_p8)
}
  0x30   : > { %s617_s23 = smov 128   ;;  %s618_s25 = smov 8  }
  0x31   : > { %160 = dma.hbm_to_vmem [thread:$0]  %s701_s30, 896, %s155_s27, %s695_s24, %s617_s23, %s617_s23, %s618_s25  }
  0x32 PF: > { %163 = sbr.rel (!%p675_p3) target bundleno = 77 (0x4d), region = 24  ;;  %s164_s26 = sand.u32 (%p675_p3), 1, %s602_s11  }
  0x33   : > { %s406_s28 = smul.u32 (%p675_p3), 56, %s164_s26  ;;  %s718_s29 = scalar_lea.sflag (%p675_p3), [#allocation6], %s164_s26 }
  0x34   : > { %s404_s4 = smul.u32 (%p675_p3), 896, %s610_s13  ;;  %s502_s30 = scalar_lea.hbm (%p675_p3), %s806_s1, 16000 }
  0x35   : > { %s168_s3 = scalar_lea.vmem (%p675_p3), [#allocation5], %s406_s28 }
  0x36   : > { %s183_s5 = sshll.u32 (%p675_p3), %s168_s3, 4  ;;  %s724_s8 = scalar_lea.hbm (%p675_p3), %s806_s1, %s404_s4  ;;  %s184_s5 = int_to_ptr.vmem [resolvable:$true] %s183_s5 }
  0x37   : > { %s498_s18 = scalar_lea.hbm (%p675_p3), %s724_s8, 896  ;;  %p503_p9 = scmp.lt.u32.totalorder (%p675_p3), %s724_s8, %s806_s1 }
  0x38   : > { %p499_p3 = scmp.ne.s32.totalorder (%p675_p3), %s724_s8, %s498_s18  ;;  %p504_p10 = scmp.lt.u32.totalorder (%p675_p3), %s502_s30, %s498_s18 }
  0x39   : > { %p506_p12 = scmp.lt.u32.totalorder %s498_s18, %s724_s8 }
  0x3a   : > { %p505_p11 = por %p504_p10, %p503_p9 }
  0x3c   : > { %p507_p13 = por %p506_p12, %p505_p11 }
  0x3e   : > { %p508_p0 = pnand %p507_p13, %p499_p3 }
  0x40   : > { %511 = shalt.err (!%p508_p0)
}
  0x41   : > { %s512_s19 = scalar_lea.vmem %s184_s5, 896  ;;  %s619_s22 = smov [#allocation5]  }
  0x42   : > { %p513_p1 = scmp.ne.s32.totalorder %s184_s5, %s512_s19  ;;  %s516_s23 = sshll.u32 %s619_s22, 4  ;;  %s517_s23 = int_to_ptr.vmem [resolvable:$false] %s516_s23 }
  0x43   : > { %s518_s25 = scalar_lea.vmem %s517_s23, 1792  ;;  %p519_p2 = scmp.lt.s32.totalorder %s184_s5, %s517_s23 }
  0x44   : > { %p520_p4 = scmp.lt.s32.totalorder %s518_s25, %s512_s19 }
  0x46   : > { %p521_p5 = por %p520_p4, %p519_p2 }
  0x48   : > { %p522_p6 = pnand %p521_p5, %p513_p1 }
  0x4a   : > { %525 = shalt.err (!%p522_p6)
}
  0x4b   : > { %s620_s26 = smov 128   ;;  %s621_s28 = smov 8  }
  0x4c   : > { %189 = dma.hbm_to_vmem [thread:$0]  %s724_s8, 896, %s184_s5, %s718_s29, %s620_s26, %s620_s26, %s621_s28  }
  0x4d PF: > { %p397_p8 = scmp.ge.s32.totalorder %s614_s14, 1  ;;  %p191_p3 = scmp.lt.s32.totalorder %s614_s14, 17 }
  0x4f   : > { %p192_p9 = pnand %p397_p8, %p191_p3 }
  0x50   : > { %s197_s3 = sand.u32 (!%p192_p9), 1, %s598_s10  }
  0x51   : > { %195 = sbr.rel (%p192_p9) target bundleno = 136 (0x88), region = 28  ;;  %s198_s6 = scalar_lea.sflag (!%p192_p9), [#allocation3], %s197_s3 }
  0x52   : > { %s407_s4 = smul.u32 (!%p192_p9), 56, %s197_s3 }
  0x54   : > { %s741_s7 = scalar_lea.vmem (!%p192_p9), [#allocation2], %s407_s4 }
  0x58   : > { %577 = dma.done.wait (%p684_p7), %s198_s6, 896  }
  0x59   : > { %579 = vsyncadd (%p684_p7), %s198_s6, 4294966400  ;;  %s207_s29 = scalar_lea.sflag [#allocation6], %s197_s3  ;;  %s210_s5 = scalar_lea.vmem [#allocation5], %s407_s4 }
  0x5a   : > { %581 = dma.done.wait (%p684_p7), %s207_s29, 896  }
  0x5b   : > { %583 = vsyncadd (%p684_p7), %s207_s29, 4294966400  ;;  %p398_p10 = scmp.ne.s32.totalorder %s606_s12, 0 }
  0x5c   : > { %v622_v0 = vmov (!%p398_p10), 0.0  }
  0x5d   : > { %248 = sbr.rel (%p398_p10) target bundleno = 100 (0x64), region = 40  ;;  %249 = vst [vmem:[#allocation7] sm:$0xff] (!%p398_p10), %v622_v0 }
  0x64 PF: > { %v250_v1 = vld [vmem:[%s741_s7] sm:$0xff]  ;;  %v251_v2 = vld [vmem:[%s741_s7 + $0x8] sm:$0xff]  ;;  %v252_v3 = vld [vmem:[%s741_s7 + $0x10] sm:$0xff]  ;;  %s623_s12 = smov [#allocation7]   ;;  %p761_p7 = scmp.eq.s32.totalorder %s384_s15, 15 }
  0x65   : > { %v253_v4 = vld [vmem:[%s741_s7 + $0x18] sm:$0xff]  ;;  %v254_v5 = vld [vmem:[%s741_s7 + $0x20] sm:$0xff]  ;;  %v257_v6 = vld [vmem:[%s210_s5] sm:$0xff]  ;;  %s296_s20 = sshll.u32 %s623_s12, 4  ;;  %s297_s20 = int_to_ptr.vmem [resolvable:$true] %s296_s20 }
  0x66   : > { %v258_v7 = vld [vmem:[%s210_s5 + $0x8] sm:$0xff]  ;;  %v259_v8 = vld [vmem:[%s210_s5 + $0x10] sm:$0xff]  ;;  %v260_v9 = vld [vmem:[%s210_s5 + $0x18] sm:$0xff]  ;;  %v264_v11 = vsub.f32 %v250_v1, %v257_v6  ;;  %s526_s18 = scalar_lea.vmem %s297_s20, 128  ;;  %p533_p0 = scmp.lt.s32.totalorder %s297_s20, %s297_s20 }
  0x67   : > { %v261_v10 = vld [vmem:[%s210_s5 + $0x20] sm:$0xff]  ;;  %v265_v12 = vsub.f32 %v251_v2, %v258_v7  ;;  %v255_v13 = vld [vmem:[%s741_s7 + $0x28] sm:$0xff]  ;;  %v262_v14 = vld [vmem:[%s210_s5 + $0x28] sm:$0xff]  ;;  %v266_v15 = vsub.f32 %v252_v3, %v259_v8  ;;  %v267_v16 = vsub.f32 %v253_v4, %v260_v9  ;;  %p527_p11 = scmp.ne.s32.totalorder %s297_s20, %s526_s18  ;;  %p534_p1 = scmp.lt.s32.totalorder %s526_s18, %s526_s18 }
  0x68   : > { %v268_v17 = vsub.f32 %v254_v5, %v261_v10  ;;  %v271_v18 = vmul.f32 %v264_v11, %v264_v11  ;;  %v256_v20 = vld [vmem:[%s741_s7 + $0x30] sm:$0xff]  ;;  %v263_v21 = vld [vmem:[%s210_s5 + $0x30] sm:$0xff]  ;;  %v269_v23 = vsub.f32 %v255_v13, %v262_v14 }
  0x69   : > { %v272_v19 = vmul.f32 %v265_v12, %v265_v12  ;;  %v273_v22 = vmul.f32 %v266_v15, %v266_v15  ;;  %v274_v24 = vmul.f32 %v267_v16, %v267_v16  ;;  %v270_v26 = vsub.f32 %v256_v20, %v263_v21  ;;  %v278_v34 = vld [vmem:[#allocation7] sm:$0xff]  ;;  %p528_p12 = pnand %p527_p11, %p761_p7  ;;  %p535_p2 = por %p534_p1, %p533_p0 }
  0x6a   : > { %v275_v27 = vmul.f32 %v268_v17, %v268_v17  ;;  %v276_v29 = vmul.f32 %v269_v23, %v269_v23 }
  0x6b   : > { %v279_v25 = vadd.f32 %v272_v19, %v271_v18  ;;  %v277_v31 = vmul.f32 %v270_v26, %v270_v26  ;;  %p529_p13 = pneg %p528_p12 }
  0x6d   : > { %v280_v28 = vadd.f32 %v279_v25, %v273_v22  ;;  %p536_p4 = pnand %p535_p2, %p529_p13 }
  0x6f   : > { %v281_v30 = vadd.f32 %v280_v28, %v274_v24 }
  0x71   : > { %v282_v32 = vadd.f32 %v281_v30, %v275_v27 }
  0x73   : > { %v283_v33 = vadd.f32 %v282_v32, %v276_v29 }
  0x75   : > { %v284_v35 = vadd.f32 %v283_v33, %v277_v31 }
  0x77   : > { %v285_v36 = vadd.f32 %v284_v35, %v278_v34 }
  0x79   : > { %286 = vst [vmem:[#allocation7] sm:$0xff] %v285_v36 }
  0x7a   : > { %539 = shalt.err (!%p536_p4)
}
  0x7b   : > { %s540_s15 = scalar_lea.hbm %s807_s2, 128 }
  0x7c   : > { %p541_p5 = scmp.ne.s32.totalorder %s807_s2, %s540_s15  ;;  %p546_p3 = scmp.lt.u32.totalorder %s540_s15, %s807_s2 }
  0x7e   : > { %p542_p6 = pnand %p541_p5, %p761_p7 }
  0x80   : > { %p543_p8 = pneg %p542_p6 }
  0x82   : > { %p548_p9 = pnand %p546_p3, %p543_p8 }
  0x84   : > { %551 = shalt.err (!%p548_p9)
}
  0x85   : > { %411 = dma.vmem_to_hbm [thread:$0]  (%p761_p7), %s297_s20, 128, %s807_s2, [#allocation4]  }
  0x86   : > { %585 = dma.done.wait (%p761_p7), [#allocation4], 128  }
  0x87   : > { %587 = vsyncadd (%p761_p7), [#allocation4], 4294967168 }
  0x88 PF: > { %s19_s14 = sadd.s32 1, %s614_s14   ;;  %s811_s9 = smov %s598_s10 }
  0x89   : > { %p16_p10 = scmp.ge.s32.totalorder %s19_s14, 18   ;;  %s812_s10 = smov %s602_s11 }
  0x8a   : > { %s813_s11 = smov %s689_s21  ;;  %s814_s12 = smov %s610_s13 }
  0x8b   : > { %s815_s13 = smov %s817_s16  ;;  %18 = sbr.rel (!%p16_p10) target bundleno = 7 (0x7), region = 83 }
  0x92   :  { %309 = vsyncpa [#allocation3], 1 }
  0x93   :  { %311 = vsyncpa [#allocation3 + $0x1], 1 }
  0x94   :  { %312 = vsyncpa [#allocation6], 1 }
  0x95   :  { %314 = vsyncpa [#allocation6 + $0x1], 1 }
  0x96   :  { %315 = vsyncpa [#allocation4], 1 }
  0x97   :  { %317 = vsyncpa [#allocation4 + $0x1], 1 }

</bundles_post_ra>
